<compile_context>
chip_gen: v7x
topology: tpu7x:2x2x1
jax: 0.10.0
libtpu: 0.0.40
codegen_flags: <defaults>
</compile_context>

<pallas_src>
import functools

import jax
import jax.numpy as jnp
from jax.experimental import pallas as pl
from jax.experimental.pallas import tpu as pltpu  # noqa: F401 (kept for parity with TPU-targeted builds)

block_size = 8       # max sequence length (causal mask size)
n_embed = 32         # C
head_size = 16       # H
dropout = 0.2        # unused at inference

# Finite "minus infinity" for the causal mask (NaN-safe: every causal row has
# an unmasked diagonal entry, so exp(att - m) underflows cleanly to 0).
_MASK_VALUE = -0.7 * float(jnp.finfo(jnp.float32).max)


def _head_kernel(x_ref, wqkv_ref, o_ref, *, head_size):
    B, T, C = x_ref.shape
    H = head_size

    # One fused projection for the whole batch: (B*T, C) @ (C, 3H).
    x = x_ref[...].astype(jnp.float32).reshape(B * T, C)
    w = wqkv_ref[...].astype(jnp.float32)          # [Wq^T*scale | Wk^T | Wv^T]
    qkv = jnp.dot(x, w, preferred_element_type=jnp.float32)   # (B*T, 3H)
    qkv = qkv.reshape(B, T, 3 * H)

    # Causal additive bias built in-kernel (0 on/below diag, big negative above).
    row = jax.lax.broadcasted_iota(jnp.int32, (T, T), 0)
    col = jax.lax.broadcasted_iota(jnp.int32, (T, T), 1)
    bias = jnp.where(row >= col, 0.0, _MASK_VALUE).astype(jnp.float32)

    # Static unroll over the (tiny) batch: per-batch compute is a couple of
    # (T, T) vreg-sized ops; grid steps would cost more than they hide.
    for b in range(B):
        q = qkv[b, :, :H]          # already scaled by C**-0.5 (folded in weight)
        k = qkv[b, :, H:2 * H]
        v = qkv[b, :, 2 * H:]

        # Scores: contract last dims of q and k (no explicit k.T / XLU transpose).
        att = jax.lax.dot_general(
            q, k, (((1,), (1,)), ((), ())),
            preferred_element_type=jnp.float32)            # (T, T)
        att = att + bias

        # Numerically-stable softmax; exact divide (latency-bound, it's hidden).
        m = jnp.max(att, axis=-1, keepdims=True)
        e = jnp.exp(att - m)
        p = e / jnp.sum(e, axis=-1, keepdims=True)

        # dropout: identity (inference mode)

        out = jnp.dot(p, v, preferred_element_type=jnp.float32)   # (T, H)
        o_ref[b] = out.astype(o_ref.dtype)


def prepare_qkv_weight(w_key, w_query, w_value, n_embed_):
    """One-time setup: fused, transposed QKV weight (C, 3H).

    NOTE: scale is C**-0.5 (1/sqrt(n_embed)) to match the given PyTorch Head,
    intentionally NOT the more common head_size**-0.5. It is folded into the
    query block of the fused weight.
    """
    scale = n_embed_ ** (-0.5)
    return jnp.concatenate(
        [jnp.transpose(w_query) * scale,
         jnp.transpose(w_key),
         jnp.transpose(w_value)],
        axis=1,
    ).astype(jnp.float32)


@jax.jit
def head_forward(x, w_qkv):
    """x: (B, T, C); w_qkv: (C, 3H) fused weight from prepare_qkv_weight."""
    B, T, C = x.shape
    H = w_qkv.shape[1] // 3

    kernel = functools.partial(_head_kernel, head_size=H)

    return pl.pallas_call(
        kernel,
        out_shape=jax.ShapeDtypeStruct((B, T, H), x.dtype),
        # Single kernel invocation: no grid, whole arrays resident in VMEM
        # (~10 KB total footprint — far below any VMEM limit on v5e/v6e/v7x).
        in_specs=[
            pl.BlockSpec((B, T, C), lambda: (0, 0, 0)),    # x: full batch
            pl.BlockSpec((C, 3 * H), lambda: (0, 0)),      # fused [Wq*s|Wk|Wv]^T
        ],
        out_specs=pl.BlockSpec((B, T, H), lambda: (0, 0, 0)),
    )(x, w_qkv)


def head_reference(x, w_key, w_query, w_value):
    """Pure-JAX reference mirroring the PyTorch forward (eval mode)."""
    B, T, C = x.shape
    k = x @ w_key.T
    q = x @ w_query.T
    v = x @ w_value.T
    att = (q @ jnp.swapaxes(k, -2, -1)) * (C ** (-0.5))
    mask = jnp.tril(jnp.ones((T, T), dtype=bool))
    att = jnp.where(mask[None, :, :], att, -jnp.inf)
    att = jax.nn.softmax(att, axis=-1)
    return att @ v


if __name__ == "__main__":
    key = jax.random.PRNGKey(0)
    k_x, k_k, k_q, k_v = jax.random.split(key, 4)

    B, T, C, H = 2, block_size, n_embed, head_size

    x = jax.random.normal(k_x, (B, T, C), dtype=jnp.float32)
    # deterministic "Linear" weights, PyTorch layout (out_features, in_features)
    bound = 1.0 / (C ** 0.5)
    w_key_p = jax.random.uniform(k_k, (H, C), jnp.float32, -bound, bound)
    w_query_p = jax.random.uniform(k_q, (H, C), jnp.float32, -bound, bound)
    w_value_p = jax.random.uniform(k_v, (H, C), jnp.float32, -bound, bound)

    # One-time setup (hoisted out of the hot path).
    w_qkv = prepare_qkv_weight(w_key_p, w_query_p, w_value_p, C)

    out = head_forward(x, w_qkv)
    out = jax.block_until_ready(out)

    ref = head_reference(x, w_key_p, w_query_p, w_value_p)
    assert out.shape == (B, T, H)
    assert jnp.allclose(out, ref, atol=1e-5, rtol=1e-4), "mismatch vs reference"

    print("KERNEL_OK")
</pallas_src>

<mosaic_0001>
module attributes {stable_mosaic.version = 11 : i64} {
  func.func @_head_kernel(%arg0: memref<2x8x32xf32, #tpu.memory_space<vmem>>, %arg1: memref<32x48xf32, #tpu.memory_space<vmem>>, %arg2: memref<2x8x16xf32, #tpu.memory_space<vmem>>) attributes {dimension_semantics = [], scalar_prefetch = 0 : i64, scratch_operands = 0 : i64, tpu.core_type = #tpu.core_type<tc>} {
    %c0 = arith.constant 0 : index
    %c0_0 = arith.constant 0 : index
    %c0_1 = arith.constant 0 : index
    %0 = vector.load %arg0[%c0, %c0_0, %c0_1] : memref<2x8x32xf32, #tpu.memory_space<vmem>>, vector<2x8x32xf32>
    %1 = vector.shape_cast %0 : vector<2x8x32xf32> to vector<16x32xf32>
    %c0_2 = arith.constant 0 : index
    %c0_3 = arith.constant 0 : index
    %2 = vector.load %arg1[%c0_2, %c0_3] : memref<32x48xf32, #tpu.memory_space<vmem>>, vector<32x48xf32>
    %cst = arith.constant dense<0.000000e+00> : vector<16x48xf32>
    %3 = tpu.matmul %1, %2, %cst {dimension_numbers = #tpu.dot_dimension_numbers<[1], [0], [0], [1], [0, 0, 1, 1], [], []>} : vector<16x32xf32>, vector<32x48xf32>, vector<16x48xf32> -> vector<16x48xf32>
    %4 = vector.shape_cast %3 : vector<16x48xf32> to vector<2x8x48xf32>
    %5 = tpu.iota {dimensions = array<i32: 0>} : vector<8x8xi32>
    %6 = tpu.iota {dimensions = array<i32: 1>} : vector<8x8xi32>
    %7 = arith.cmpi sge, %5, %6 : vector<8x8xi32>
    %cst_4 = arith.constant 0.000000e+00 : f32
    %cst_5 = arith.constant -2.38197633E+38 : f32
    %8 = vector.broadcast %cst_4 : f32 to vector<8x8xf32>
    %9 = vector.broadcast %cst_5 : f32 to vector<8x8xf32>
    %10 = arith.select %7, %8, %9 : vector<8x8xi1>, vector<8x8xf32>
    %11 = vector.extract_strided_slice %4 {offsets = [0, 0, 0], sizes = [1, 8, 16], strides = [1, 1, 1]} : vector<2x8x48xf32> to vector<1x8x16xf32>
    %12 = vector.shape_cast %11 : vector<1x8x16xf32> to vector<8x16xf32>
    %13 = vector.extract_strided_slice %4 {offsets = [0, 0, 16], sizes = [1, 8, 16], strides = [1, 1, 1]} : vector<2x8x48xf32> to vector<1x8x16xf32>
    %14 = vector.shape_cast %13 : vector<1x8x16xf32> to vector<8x16xf32>
    %15 = vector.extract_strided_slice %4 {offsets = [0, 0, 32], sizes = [1, 8, 16], strides = [1, 1, 1]} : vector<2x8x48xf32> to vector<1x8x16xf32>
    %16 = vector.shape_cast %15 : vector<1x8x16xf32> to vector<8x16xf32>
    %cst_6 = arith.constant dense<0.000000e+00> : vector<8x8xf32>
    %17 = tpu.matmul %12, %14, %cst_6 {dimension_numbers = #tpu.dot_dimension_numbers<[1], [1], [0], [0], [0, 0, 1, 0], [], []>} : vector<8x16xf32>, vector<8x16xf32>, vector<8x8xf32> -> vector<8x8xf32>
    %18 = arith.addf %17, %10 : vector<8x8xf32>
    %cst_7 = arith.constant dense<0xFF800000> : vector<8xf32>
    %19 = vector.multi_reduction <maximumf>, %18, %cst_7 [1] : vector<8x8xf32> to vector<8xf32>
    %20 = vector.shape_cast %19 : vector<8xf32> to vector<8x1xf32>
    %21 = vector.broadcast %20 : vector<8x1xf32> to vector<8x8xf32>
    %22 = arith.subf %18, %21 : vector<8x8xf32>
    %23 = math.exp %22 : vector<8x8xf32>
    %cst_8 = arith.constant dense<0.000000e+00> : vector<8xf32>
    %24 = vector.multi_reduction <add>, %23, %cst_8 [1] : vector<8x8xf32> to vector<8xf32>
    %25 = vector.shape_cast %24 : vector<8xf32> to vector<8x1xf32>
    %26 = vector.broadcast %25 : vector<8x1xf32> to vector<8x8xf32>
    %27 = arith.divf %23, %26 : vector<8x8xf32>
    %cst_9 = arith.constant dense<0.000000e+00> : vector<8x16xf32>
    %28 = tpu.matmul %27, %16, %cst_9 {dimension_numbers = #tpu.dot_dimension_numbers<[1], [0], [0], [1], [0, 0, 1, 1], [], []>} : vector<8x8xf32>, vector<8x16xf32>, vector<8x16xf32> -> vector<8x16xf32>
    %c0_10 = arith.constant 0 : index
    %c0_11 = arith.constant 0 : index
    %c0_12 = arith.constant 0 : index
    %29 = vector.load %arg2[%c0_10, %c0_11, %c0_12] : memref<2x8x16xf32, #tpu.memory_space<vmem>>, vector<1x8x16xf32>
    %30 = vector.shape_cast %29 : vector<1x8x16xf32> to vector<8x16xf32>
    %31 = vector.shape_cast %28 : vector<8x16xf32> to vector<1x8x16xf32>
    tpu.vector_store %arg2[%c0_10, %c0_11, %c0_12], %31 {strides = array<i32>} : memref<2x8x16xf32, #tpu.memory_space<vmem>>, vector<1x8x16xf32>,
    %32 = vector.extract_strided_slice %4 {offsets = [1, 0, 0], sizes = [1, 8, 16], strides = [1, 1, 1]} : vector<2x8x48xf32> to vector<1x8x16xf32>
    %33 = vector.shape_cast %32 : vector<1x8x16xf32> to vector<8x16xf32>
    %34 = vector.extract_strided_slice %4 {offsets = [1, 0, 16], sizes = [1, 8, 16], strides = [1, 1, 1]} : vector<2x8x48xf32> to vector<1x8x16xf32>
    %35 = vector.shape_cast %34 : vector<1x8x16xf32> to vector<8x16xf32>
    %36 = vector.extract_strided_slice %4 {offsets = [1, 0, 32], sizes = [1, 8, 16], strides = [1, 1, 1]} : vector<2x8x48xf32> to vector<1x8x16xf32>
    %37 = vector.shape_cast %36 : vector<1x8x16xf32> to vector<8x16xf32>
    %cst_13 = arith.constant dense<0.000000e+00> : vector<8x8xf32>
    %38 = tpu.matmul %33, %35, %cst_13 {dimension_numbers = #tpu.dot_dimension_numbers<[1], [1], [0], [0], [0, 0, 1, 0], [], []>} : vector<8x16xf32>, vector<8x16xf32>, vector<8x8xf32> -> vector<8x8xf32>
    %39 = arith.addf %38, %10 : vector<8x8xf32>
    %cst_14 = arith.constant dense<0xFF800000> : vector<8xf32>
    %40 = vector.multi_reduction <maximumf>, %39, %cst_14 [1] : vector<8x8xf32> to vector<8xf32>
    %41 = vector.shape_cast %40 : vector<8xf32> to vector<8x1xf32>
    %42 = vector.broadcast %41 : vector<8x1xf32> to vector<8x8xf32>
    %43 = arith.subf %39, %42 : vector<8x8xf32>
    %44 = math.exp %43 : vector<8x8xf32>
    %cst_15 = arith.constant dense<0.000000e+00> : vector<8xf32>
    %45 = vector.multi_reduction <add>, %44, %cst_15 [1] : vector<8x8xf32> to vector<8xf32>
    %46 = vector.shape_cast %45 : vector<8xf32> to vector<8x1xf32>
    %47 = vector.broadcast %46 : vector<8x1xf32> to vector<8x8xf32>
    %48 = arith.divf %44, %47 : vector<8x8xf32>
    %cst_16 = arith.constant dense<0.000000e+00> : vector<8x16xf32>
    %49 = tpu.matmul %48, %37, %cst_16 {dimension_numbers = #tpu.dot_dimension_numbers<[1], [0], [0], [1], [0, 0, 1, 1], [], []>} : vector<8x8xf32>, vector<8x16xf32>, vector<8x16xf32> -> vector<8x16xf32>
    %c1 = arith.constant 1 : index
    %c0_17 = arith.constant 0 : index
    %c0_18 = arith.constant 0 : index
    %50 = vector.load %arg2[%c1, %c0_17, %c0_18] : memref<2x8x16xf32, #tpu.memory_space<vmem>>, vector<1x8x16xf32>
    %51 = vector.shape_cast %50 : vector<1x8x16xf32> to vector<8x16xf32>
    %52 = vector.shape_cast %49 : vector<8x16xf32> to vector<1x8x16xf32>
    tpu.vector_store %arg2[%c1, %c0_17, %c0_18], %52 {strides = array<i32>} : memref<2x8x16xf32, #tpu.memory_space<vmem>>, vector<1x8x16xf32>,
    return
  }
}

</mosaic_0001>

<bundles_post_ra>
// kernel: head_forward.1
= control target key start
LH: loop header
LB: loop body
LE: loop exit
PB: predicated region body
PF: predicated region fallthrough
CT: control target
= control target key end

     0   :  { %7 = vsyncpa [#allocation3], 0  ;;  %s730_s0 = inlined_call_operand.hbm [shape: f32[2,8,32], index: 0, kind: input, shape index: {}]   ;;  %s731_s1 = inlined_call_operand.hbm [shape: f32[32,48], index: 1, kind: input, shape index: {}]   ;;  %s732_s2 = inlined_call_operand.hbm [shape: f32[2,8,16], index: 2, kind: output, shape index: {}]  }
   0x1   :  { %8 = vsyncpa [#allocation6], 0 }
   0x2   :  { %9 = vsyncpa [#allocation4], 0  ;;  %s636_s9 = smov [#allocation2]   ;;  %s564_s13 = scalar_lea.hbm %s730_s0, 256 }
   0x3   :  { %s15_s10 = sshll.u32 %s636_s9, 4  ;;  %p565_p0 = scmp.ne.s32.totalorder %s730_s0, %s564_s13  ;;  %s16_s10 = int_to_ptr.vmem [resolvable:$true] %s15_s10 }
   0x4   :  { %p568_p1 = scmp.lt.u32.totalorder %s564_s13, %s730_s0 }
   0x6   :  { %p570_p2 = pnand %p568_p1, %p565_p0 }
   0x8   :  { %573 = shalt.err (!%p570_p2)
}
   0x9   :  { %s574_s18 = scalar_lea.vmem %s16_s10, 256  ;;  %p579_p4 = scmp.lt.s32.totalorder %s16_s10, %s16_s10 }
   0xa   :  { %p575_p3 = scmp.ne.s32.totalorder %s16_s10, %s574_s18  ;;  %p580_p5 = scmp.lt.s32.totalorder %s574_s18, %s574_s18 }
   0xc   :  { %p581_p6 = por %p580_p5, %p579_p4 }
   0xe   :  { %p582_p7 = pnand %p581_p6, %p575_p3 }
  0x10   :  { %585 = shalt.err (!%p582_p7)
}
  0x11   :  { %s637_s19 = smov 128   ;;  %s638_s20 = smov 8  }
  0x12   :  { %21 = dma.hbm_to_vmem [thread:$0]  %s730_s0, 256, %s16_s10, [#allocation3], %s637_s19, %s637_s19, %s638_s20  }
  0x13   :  { %s639_s23 = smov [#allocation5]   ;;  %s586_s27 = scalar_lea.hbm %s731_s1, 512 }
  0x14   :  { %s27_s24 = sshll.u32 %s639_s23, 4  ;;  %p587_p8 = scmp.ne.s32.totalorder %s731_s1, %s586_s27  ;;  %s28_s24 = int_to_ptr.vmem [resolvable:$true] %s27_s24 }
  0x15   :  { %p590_p9 = scmp.lt.u32.totalorder %s586_s27, %s731_s1 }
  0x17   :  { %p592_p10 = pnand %p590_p9, %p587_p8 }
  0x19   :  { %595 = shalt.err (!%p592_p10)
}
  0x1a   :  { %s596_s4 = scalar_lea.vmem %s28_s24, 512  ;;  %p601_p12 = scmp.lt.s32.totalorder %s28_s24, %s28_s24 }
  0x1b   :  { %p597_p11 = scmp.ne.s32.totalorder %s28_s24, %s596_s4  ;;  %p602_p13 = scmp.lt.s32.totalorder %s596_s4, %s596_s4 }
  0x1d   :  { %p603_p0 = por %p602_p13, %p601_p12 }
  0x1f   :  { %p604_p1 = pnand %p603_p0, %p597_p11 }
  0x21   :  { %607 = shalt.err (!%p604_p1)
}
  0x22   :  { %33 = dma.hbm_to_vmem [thread:$0]  %s731_s1, 512, %s28_s24, [#allocation6], %s637_s19, %s637_s19, %s638_s20  }
  0x23   :  { %630 = dma.done.wait [#allocation3], 256  }
  0x24   :  { %631 = vsyncadd [#allocation3], 4294967040 }
  0x25   :  { %632 = dma.done.wait [#allocation6], 512  }
  0x26   :  { %633 = vsyncadd [#allocation6], 4294966784  ;;  %vm46_vm0 = vcmask 261120   ;;  %v42_v0 = vld [vmem:[#allocation5] sm:$0xff]  ;;  %v43_v1 = vld [vmem:[#allocation5 + $0x8] sm:$0xff]  ;;  %v640_v8 = vmov 0.0   ;;  %v128_v13 = vlaneseq }
  0x27   :  { %v44_v2 = vld [vmem:[#allocation5 + $0x10] sm:$0xff]  ;;  %v538_v3 = vpack.c.bf16 %v43_v1, %v42_v0  ;;  %v45_v4 = vld [vmem:[#allocation5 + $0x18] sm:$0xff]  ;;  %518 = vmatprep.subr.mxu1 %v640_v8  ;;  %vm641_vm1 = vmmov 0   ;;  %s642_s1 = smov 112   ;;  %vm137_vm2 = vcmask 130048   ;;  %vm212_vm4 = vcmask 64512  }
  0x28   :  { %v40_v5 = vld [vmem:[#allocation2] sm:$0xff]  ;;  %v542_v6 = vpack.c.bf16 %v45_v4, %v44_v2  ;;  %v41_v7 = vld [vmem:[#allocation2 + $0x8] sm:$0xff]  ;;  %520 = vmatprep.mubr.msk.f32.mxu1 %vm641_vm1, %v640_v8  ;;  %v129_v14 = vshrl.u32 %v128_v13, 7  ;;  %v131_v15 = vand.u32 127, %v128_v13  ;;  %v643_v16 = vmov -2.3819763e+38  }
  0x29   :  { %515 = vmatprep.mubr.msk.f32.mxu0 %vm46_vm0, %v40_v5  ;;  %539 = vmatprep.subr.bf16.mxu0 %v538_v3  ;;  %s644_s6 = smov 96   ;;  %s645_s7 = smov [#allocation7]  }
  0x2a   :  { %541 = vmatpush3.bf16.msra.mxu0 %v538_v3  ;;  %vm132_vm3 = vcmp.ge.s32.totalorder %v129_v14, %v131_v15  ;;  %s472_s8 = sshll.u32 %s645_s7, 4  ;;  %s473_s8 = int_to_ptr.vmem [resolvable:$true] %s472_s8 }
  0x2b   :  { %543 = vmatprep.subr.bf16.mxu0 %v542_v6  ;;  %v133_v17 = vsel %vm132_vm3, 0.0, %v643_v16  ;;  %s608_s9 = scalar_lea.vmem %s473_s8, 256  ;;  %p613_p3 = scmp.lt.s32.totalorder %s473_s8, %s473_s8 }
  0x2c   :  { %p609_p2 = scmp.ne.s32.totalorder %s473_s8, %s608_s9  ;;  %p614_p4 = scmp.lt.s32.totalorder %s608_s9, %s608_s9 }
  0x2e   :  { %545 = vmatpush3.bf16.msra.mxu0 %v542_v6  ;;  %p615_p5 = por %p614_p4, %p613_p3 }
  0x2f   :  { %528 = vmatprep.subr.mxu0 %v640_v8 }
  0x30   :  { %p616_p6 = pnand %p615_p5, %p609_p2 }
  0x31   :  { %516 = vmatmul.mubr.msk.f32.vlgmr.msra.gmra.mrb[0].mxu0 %vm46_vm0, %v41_v7 }
  0x32   :  { %530 = vmatprep.mubr.msk.f32.mxu0 %vm641_vm1, %v640_v8 }
 0x104   :  { %v517_v9 = vpop.f32.mrb[0].mxu0 }
 0x105   :  { %v119_v10 = vpop.f32.mrb[1].mxu0 }
 0x106   :  { %135 = vrot.lane.b32.xlu0 %v119_v10, %s642_s1 }
 0x10a   :  { %302 = vrot.lane.b32.xlu0 %v517_v9, %s642_s1 }
 0x178   :  { %v136_v11 = vpop.permute.xlu0 %135 }
 0x179   :  { %519 = vmatpush3.xpose.msk.msra.mxu1 %vm137_vm2, %v136_v11 }
 0x17a   :  { %523 = vmatprep.subr.mxu1 %v640_v8 }
 0x17c   :  { %521 = vmatmul.mubr.msk.f32.vlgmr.msra.gmra.mrb[0].mxu1 %vm137_vm2, %v119_v10  ;;  %v303_v12 = vpop.permute.xlu0 %302 }
 0x17d   :  { %529 = vmatpush3.xpose.msk.msra.mxu0 %vm137_vm2, %v303_v12  ;;  %525 = vmatprep.mubr.msk.f32.mxu1 %vm641_vm1, %v640_v8 }
 0x180   :  { %531 = vmatmul.mubr.msk.f32.vlgmr.msra.gmra.mrb[2].mxu0 %vm137_vm2, %v517_v9 }
 0x24f   :  { %v208_v18 = vpop.f32.mrb[0].mxu1 }
 0x250   :  { %v209_v19 = vadd.f32 %v208_v18, %v133_v17  ;;  %v522_v20 = vpop.f32.mrb[1].mxu1 }
 0x252   :  { %v213_v21 = vsel %vm212_vm4, %v209_v19, -inf }
 0x253   :  { %214 = vmax.xlane.f32.xlu1 %v213_v21  ;;  %v374_v22 = vpop.f32.mrb[2].mxu0 }
 0x254   :  { %v375_v23 = vadd.f32 %v374_v22, %v133_v17  ;;  %v532_v24 = vpop.f32.mrb[3].mxu0 }
 0x256   :  { %v378_v25 = vsel %vm212_vm4, %v375_v23, -inf }
 0x257   :  { %379 = vmax.xlane.f32.xlu1 %v378_v25 }
 0x2e0   :  { %v215_v26 = vpop.xlane.xlu1 %214 }
 0x2e1   :  { %v216_v27 = vsub.f32 %v209_v19, %v215_v26 }
 0x2e3   :  { %v217_v28 = vmul.f32 1.442695, %v216_v27 }
 0x2e4   :  { %v380_v29 = vpop.xlane.xlu1 %379 }
 0x2e5   :  { %556 = vpow2.f32 %v217_v28  ;;  %v381_v30 = vsub.f32 %v375_v23, %v380_v29 }
 0x2e7   :  { %v382_v31 = vmul.f32 1.442695, %v381_v30 }
 0x2e9   :  { %558 = vpow2.f32 %v382_v31 }
 0x2ef   :  { %v557_v32 = vpop.eup %556 }
 0x2f0   :  { %v219_v33 = vsel %vm212_vm4, %v557_v32, 0.0 }
 0x2f1   :  { %220 = vadd.xlane.f32.xlu0 %v219_v33 }
 0x2f3   :  { %v559_v34 = vpop.eup %558 }
 0x2f4   :  { %v384_v35 = vsel %vm212_vm4, %v559_v34, 0.0 }
 0x2f5   :  { %385 = vadd.xlane.f32.xlu1 %v384_v35 }
 0x306   :  { %224 = vrot.lane.b32.xlu1 %v119_v10, %s644_s6 }
 0x30a   :  { %389 = vrot.lane.b32.xlu1 %v517_v9, %s644_s6 }
 0x37e   :  { %v221_v36 = vpop.xlane.xlu0 %220 }
 0x37f   :  { %560 = vrcp.f32 %v221_v36 }
 0x382   :  { %v386_v37 = vpop.xlane.xlu1 %385 }
 0x383   :  { %562 = vrcp.f32 %v386_v37 }
 0x386   :  { %v225_v38 = vpop.permute.xlu1 %224 }
 0x387   :  { %524 = vmatpush3.msra.mxu1 %v225_v38 }
 0x388   :  { %533 = vmatprep.subr.mxu1 %v640_v8 }
 0x389   :  { %v561_v39 = vpop.eup %560 }
 0x38a   :  { %v223_v40 = vmul.f32 %v561_v39, %v557_v32  ;;  %v390_v41 = vpop.permute.xlu1 %389 }
 0x38c   :  { %526 = vmatmul.mubr.msk.f32.vlgmr.msra.gmra.mrb[2].mxu1 %vm212_vm4, %v223_v40 }
 0x38d   :  { %v563_v42 = vpop.eup %562  ;;  %534 = vmatpush3.msra.mxu1 %v390_v41  ;;  %535 = vmatprep.mubr.msk.f32.mxu1 %vm641_vm1, %v640_v8 }
 0x38e   :  { %v388_v43 = vmul.f32 %v563_v42, %v559_v34 }
 0x390   :  { %536 = vmatmul.mubr.msk.f32.vlgmr.msra.gmra.mrb[4].mxu1 %vm212_vm4, %v388_v43 }
 0x45f   :  { %v296_v44 = vpop.f32.mrb[2].mxu1 }
 0x460   :  { %300 = vst.msk [vmem:[#allocation7] sm:$0xff] %vm137_vm2, %v296_v44  ;;  %v527_v45 = vpop.f32.mrb[3].mxu1 }
 0x463   :  { %v461_v46 = vpop.f32.mrb[4].mxu1 }
 0x464   :  { %466 = vst.msk [vmem:[#allocation7 + $0x8] sm:$0xff] %vm137_vm2, %v461_v46  ;;  %v537_v47 = vpop.f32.mrb[5].mxu1 }
 0x465   :  { %619 = shalt.err (!%p616_p6)
}
 0x466   :  { %s620_s12 = scalar_lea.hbm %s732_s2, 256 }
 0x467   :  { %p621_p7 = scmp.ne.s32.totalorder %s732_s2, %s620_s12  ;;  %p624_p8 = scmp.lt.u32.totalorder %s620_s12, %s732_s2 }
 0x469   :  { %p626_p9 = pnand %p624_p8, %p621_p7 }
 0x46b   :  { %629 = shalt.err (!%p626_p9)
}
 0x46c   :  { %478 = dma.vmem_to_hbm [thread:$0]  %s473_s8, 256, %s732_s2, [#allocation4], %s637_s19, %s637_s19, %s638_s20  }
 0x46d   :  { %634 = dma.done.wait [#allocation4], 256  }
 0x46e   :  { %635 = vsyncadd [#allocation4], 4294967040 }
 0x46f   :  { %482 = vsyncpa [#allocation3], 1 }
 0x470   :  { %483 = vsyncpa [#allocation6], 1 }
 0x471   :  { %484 = vsyncpa [#allocation4], 1 }

</bundles_post_ra>
